<compile_context>
chip_gen: v5e
topology: v5e:2x2
jax: 0.10.0
libtpu: 0.0.40
codegen_flags: <defaults>
</compile_context>

<pallas_src>
import functools

import jax
import jax.numpy as jnp
from jax.experimental import pallas as pl
from jax.experimental.pallas import tpu as pltpu  # noqa: F401  (TPU backend)

LANE = 128


def _round_up(x, m):
    return ((x + m - 1) // m) * m


def _full_spec(shape):
    """Whole-array block for a grid-less pallas_call (0-arg index_map)."""
    zeros = (0,) * len(shape)
    return pl.BlockSpec(tuple(shape), lambda: zeros)


# ----------------------------------------------------------------------------
# Fused kernel: hidden Linear+ReLU layers, token mean, final Linear (VPU dot).
# ----------------------------------------------------------------------------
def _fused_mlp_kernel(x_ref, w_ref, b_ref, o_ref, *, batch, tokens, num_layers):
    """x: (M, P) bf16, w: (L, P, P) bf16, b: (L, 1, P) f32, out: (B, 1) f32.

    Layer L-1 (out_dim == 1) is stored transposed: its real weight column lives
    in w[L-1, 0, :] (lane-dense row) and its scalar bias in b[L-1, 0, 0].
    """
    m = batch * tokens
    x = x_ref[...]                                                   # (M, P) bf16

    # Hidden layers: bf16 MXU matmul -> f32 accumulator -> bias + ReLU (f32 VPU).
    # Python loop unrolls at trace time.
    for i in range(num_layers - 1):
        acc = jnp.dot(x, w_ref[i], preferred_element_type=jnp.float32)  # (M, P) f32
        acc = jnp.maximum(acc + b_ref[i], 0.0)
        x = acc.astype(jnp.bfloat16)                                 # next MXU operand

    # Token mean, commuted ahead of the (linear, activation-free) last layer:
    #   mean_t(x W + b) == (mean_t x) W + b.
    # Averaging matrix built in-kernel from iota: avg[g, r] = 1/T iff flat row r
    # belongs to batch group g (no extra operand, no host-side per-call ops).
    gi = jax.lax.broadcasted_iota(jnp.int32, (batch, m), 0)
    ri = jax.lax.broadcasted_iota(jnp.int32, (batch, m), 1)
    sel = jnp.logical_and(ri >= gi * tokens, ri < (gi + 1) * tokens)
    avg = jnp.where(sel, 1.0 / tokens, 0.0).astype(jnp.bfloat16)     # (B, M)
    x_mean = jnp.dot(avg, x, preferred_element_type=jnp.float32)     # (B, P) f32

    # Final layer (out_dim == 1): lane-dense VPU multiply + lane reduction
    # against the real weight column (stored transposed as a row), instead of a
    # padded 128-wide MXU matmul + padded store + wrapper slice.
    w_row = w_ref[num_layers - 1, 0:1, :].astype(jnp.float32)        # (1, P)
    y = jnp.sum(x_mean * w_row, axis=-1, keepdims=True)              # (B, 1)
    y = y + b_ref[num_layers - 1, 0:1, 0:1]                          # scalar bias
    o_ref[...] = y.astype(o_ref.dtype)


# ----------------------------------------------------------------------------
# Wrapper
# ----------------------------------------------------------------------------
def mlp_score_decoder_forward(reg_tokens, w_stack, b_stack, pad_dim):
    """reg_tokens: (b, num_tokens, in_dim) -> (b, 1)."""
    b, t, d = reg_tokens.shape
    m = b * t
    num_layers = int(w_stack.shape[0])

    # Flatten, cast matmul operand to bf16, lane-pad the feature dim to P.
    x2d = reg_tokens.reshape(m, d).astype(jnp.bfloat16)
    if d < pad_dim:
        x2d = jnp.pad(x2d, ((0, 0), (0, pad_dim - d)))

    # Advisory cost hint: this custom call is tiny.
    flops = (2 * m * pad_dim * pad_dim * (num_layers - 1)   # hidden matmuls
             + 2 * b * m * pad_dim                          # token mean
             + 2 * b * pad_dim)                             # final VPU dot
    bytes_accessed = (x2d.size * 2 + w_stack.size * 2
                      + b_stack.size * 4 + b * 4)

    kernel = functools.partial(_fused_mlp_kernel,
                               batch=b, tokens=t, num_layers=num_layers)
    out = pl.pallas_call(
        kernel,
        out_shape=jax.ShapeDtypeStruct((b, 1), jnp.float32),
        in_specs=[_full_spec(x2d.shape),
                  _full_spec(w_stack.shape),
                  _full_spec(b_stack.shape)],
        out_specs=_full_spec((b, 1)),
        cost_estimate=pl.CostEstimate(flops=int(flops),
                                      transcendentals=0,
                                      bytes_accessed=int(bytes_accessed)),
    )(x2d, w_stack, b_stack)
    return out.astype(reg_tokens.dtype)


# ----------------------------------------------------------------------------
# Parameters
# ----------------------------------------------------------------------------
def init_mlp_score_decoder_params(key, in_dim, hidden_dim, num_layers,
                                  dtype=jnp.float32):
    """nn.Linear-shaped params; weights stored as (in_features, out_features)."""
    h = [hidden_dim] * (num_layers - 1)
    dims_in = [in_dim] + h
    dims_out = h + [1]
    params = []
    for n, k in zip(dims_in, dims_out):
        key, kw, kb = jax.random.split(key, 3)
        bound = 1.0 / (n ** 0.5)
        w = jax.random.uniform(kw, (n, k), dtype, minval=-bound, maxval=bound)
        bias = jax.random.uniform(kb, (1, k), dtype, minval=-bound, maxval=bound)
        params.append((w, bias))
    return params


def pack_params_for_kernel(params):
    """Pack all layers into one bf16 weight slab + one f32 bias slab (done once).

    Every feature dim is zero-padded to a common 128-lane multiple P.  Padding
    is exact: padded hidden units are 0 after bias+ReLU and meet zero weight
    rows in the next layer.  The last layer (out_dim == 1) is stored TRANSPOSED
    (its weight column as the lane-dense row w_stack[L-1, 0, :], its scalar
    bias at b_stack[L-1, 0, 0]) so the kernel can finish with a VPU dot.
    """
    num_layers = len(params)
    k_dims = [w.shape[0] for w, _ in params]
    pad_dim = _round_up(max(k_dims), LANE)

    w_stack = jnp.zeros((num_layers, pad_dim, pad_dim), jnp.float32)
    b_stack = jnp.zeros((num_layers, 1, pad_dim), jnp.float32)
    for i, (w, bias) in enumerate(params):
        n, k = w.shape
        if i < num_layers - 1:
            w_stack = w_stack.at[i, :n, :k].set(w)
            b_stack = b_stack.at[i, :, :k].set(bias)
        else:
            assert k == 1, "MlpScoreDecoder last layer must have out_dim == 1"
            w_stack = w_stack.at[i, 0, :n].set(w[:, 0])
            b_stack = b_stack.at[i, 0, 0].set(bias[0, 0])
    return w_stack.astype(jnp.bfloat16), b_stack, pad_dim


# ----------------------------------------------------------------------------
# Pure-JAX reference (faithful to the PyTorch op order: mean LAST, f32 math)
# ----------------------------------------------------------------------------
def reference_forward(reg_tokens, params):
    x = reg_tokens
    for w, bias in params[:-1]:
        x = jnp.maximum(jnp.einsum("btk,kn->btn", x, w) + bias[None, :, :], 0.0)
    w_last, b_last = params[-1]
    x = jnp.einsum("btk,kn->btn", x, w_last) + b_last[None, :, :]
    return jnp.mean(x, axis=1)


# ----------------------------------------------------------------------------
if __name__ == "__main__":
    key = jax.random.PRNGKey(0)
    k_x, k_p = jax.random.split(key)

    batch = 2
    num_tokens = 4      # fixed by the module: reg_tokens shape (b, 4, embed_dim)
    in_dim = 32
    hidden_dim = 32
    num_layers = 3

    reg_tokens = jax.random.normal(k_x, (batch, num_tokens, in_dim), jnp.float32)
    params = init_mlp_score_decoder_params(k_p, in_dim, hidden_dim, num_layers)
    w_stack, b_stack, pad_dim = pack_params_for_kernel(params)

    out = mlp_score_decoder_forward(reg_tokens, w_stack, b_stack, pad_dim)
    out = jax.block_until_ready(out)

    ref = reference_forward(reg_tokens, params)
    assert out.shape == (batch, 1), out.shape
    # Tolerance covers bf16 matmul operands (f32 accumulation) vs the f32
    # reference; the mean-commutation and zero-padding are mathematically exact.
    assert jnp.allclose(out, ref, atol=2e-2, rtol=2e-2), (out, ref)

    print("KERNEL_OK")
</pallas_src>

<mosaic_0001>
module attributes {stable_mosaic.version = 11 : i64} {
  func.func @_fused_mlp_kernel(%arg0: memref<8x128xbf16, #tpu.memory_space<vmem>>, %arg1: memref<3x128x128xbf16, #tpu.memory_space<vmem>>, %arg2: memref<3x1x128xf32, #tpu.memory_space<vmem>>, %arg3: memref<2x1xf32, #tpu.memory_space<vmem>>) attributes {dimension_semantics = [], scalar_prefetch = 0 : i64, scratch_operands = 0 : i64, tpu.core_type = #tpu.core_type<tc>} {
    %c0 = arith.constant 0 : index
    %c0_0 = arith.constant 0 : index
    %0 = vector.load %arg0[%c0, %c0_0] : memref<8x128xbf16, #tpu.memory_space<vmem>>, vector<8x128xbf16>
    %c0_1 = arith.constant 0 : index
    %c0_2 = arith.constant 0 : index
    %c0_3 = arith.constant 0 : index
    %1 = vector.load %arg1[%c0_1, %c0_2, %c0_3] : memref<3x128x128xbf16, #tpu.memory_space<vmem>>, vector<1x128x128xbf16>
    %2 = vector.shape_cast %1 : vector<1x128x128xbf16> to vector<128x128xbf16>
    %cst = arith.constant dense<0.000000e+00> : vector<8x128xf32>
    %3 = tpu.matmul %0, %2, %cst {dimension_numbers = #tpu.dot_dimension_numbers<[1], [0], [0], [1], [0, 0, 1, 1], [], []>} : vector<8x128xbf16>, vector<128x128xbf16>, vector<8x128xf32> -> vector<8x128xf32>
    %c0_4 = arith.constant 0 : index
    %c0_5 = arith.constant 0 : index
    %c0_6 = arith.constant 0 : index
    %4 = vector.load %arg2[%c0_4, %c0_5, %c0_6] : memref<3x1x128xf32, #tpu.memory_space<vmem>>, vector<1x1x128xf32>
    %5 = vector.shape_cast %4 : vector<1x1x128xf32> to vector<1x128xf32>
    %6 = vector.broadcast %5 : vector<1x128xf32> to vector<8x128xf32>
    %7 = arith.addf %3, %6 : vector<8x128xf32>
    %cst_7 = arith.constant 0.000000e+00 : f32
    %8 = vector.broadcast %cst_7 : f32 to vector<8x128xf32>
    %9 = arith.maximumf %7, %8 : vector<8x128xf32>
    %10 = arith.truncf %9 : vector<8x128xf32> to vector<8x128xbf16>
    %c1 = arith.constant 1 : index
    %c0_8 = arith.constant 0 : index
    %c0_9 = arith.constant 0 : index
    %11 = vector.load %arg1[%c1, %c0_8, %c0_9] : memref<3x128x128xbf16, #tpu.memory_space<vmem>>, vector<1x128x128xbf16>
    %12 = vector.shape_cast %11 : vector<1x128x128xbf16> to vector<128x128xbf16>
    %cst_10 = arith.constant dense<0.000000e+00> : vector<8x128xf32>
    %13 = tpu.matmul %10, %12, %cst_10 {dimension_numbers = #tpu.dot_dimension_numbers<[1], [0], [0], [1], [0, 0, 1, 1], [], []>} : vector<8x128xbf16>, vector<128x128xbf16>, vector<8x128xf32> -> vector<8x128xf32>
    %c1_11 = arith.constant 1 : index
    %c0_12 = arith.constant 0 : index
    %c0_13 = arith.constant 0 : index
    %14 = vector.load %arg2[%c1_11, %c0_12, %c0_13] : memref<3x1x128xf32, #tpu.memory_space<vmem>>, vector<1x1x128xf32>
    %15 = vector.shape_cast %14 : vector<1x1x128xf32> to vector<1x128xf32>
    %16 = vector.broadcast %15 : vector<1x128xf32> to vector<8x128xf32>
    %17 = arith.addf %13, %16 : vector<8x128xf32>
    %cst_14 = arith.constant 0.000000e+00 : f32
    %18 = vector.broadcast %cst_14 : f32 to vector<8x128xf32>
    %19 = arith.maximumf %17, %18 : vector<8x128xf32>
    %20 = arith.truncf %19 : vector<8x128xf32> to vector<8x128xbf16>
    %21 = tpu.iota {dimensions = array<i32: 0>} : vector<2x8xi32>
    %22 = tpu.iota {dimensions = array<i32: 1>} : vector<2x8xi32>
    %c4_i32 = arith.constant 4 : i32
    %23 = vector.broadcast %c4_i32 : i32 to vector<2x8xi32>
    %24 = arith.muli %21, %23 : vector<2x8xi32>
    %25 = arith.cmpi sge, %22, %24 : vector<2x8xi32>
    %c1_i32 = arith.constant 1 : i32
    %26 = vector.broadcast %c1_i32 : i32 to vector<2x8xi32>
    %27 = arith.addi %21, %26 : vector<2x8xi32>
    %c4_i32_15 = arith.constant 4 : i32
    %28 = vector.broadcast %c4_i32_15 : i32 to vector<2x8xi32>
    %29 = arith.muli %27, %28 : vector<2x8xi32>
    %30 = arith.cmpi slt, %22, %29 : vector<2x8xi32>
    %31 = arith.andi %25, %30 : vector<2x8xi1>
    %cst_16 = arith.constant 2.500000e-01 : f32
    %cst_17 = arith.constant 0.000000e+00 : f32
    %32 = vector.broadcast %cst_16 : f32 to vector<2x8xf32>
    %33 = vector.broadcast %cst_17 : f32 to vector<2x8xf32>
    %34 = arith.select %31, %32, %33 : vector<2x8xi1>, vector<2x8xf32>
    %35 = arith.truncf %34 : vector<2x8xf32> to vector<2x8xbf16>
    %cst_18 = arith.constant dense<0.000000e+00> : vector<2x128xf32>
    %36 = tpu.matmul %35, %20, %cst_18 {dimension_numbers = #tpu.dot_dimension_numbers<[1], [0], [0], [1], [0, 0, 1, 1], [], []>} : vector<2x8xbf16>, vector<8x128xbf16>, vector<2x128xf32> -> vector<2x128xf32>
    %c2 = arith.constant 2 : index
    %c0_19 = arith.constant 0 : index
    %c0_20 = arith.constant 0 : index
    %37 = vector.load %arg1[%c2, %c0_19, %c0_20] : memref<3x128x128xbf16, #tpu.memory_space<vmem>>, vector<1x1x128xbf16>
    %38 = vector.shape_cast %37 : vector<1x1x128xbf16> to vector<1x128xbf16>
    %39 = arith.extf %38 : vector<1x128xbf16> to vector<1x128xf32>
    %40 = vector.broadcast %39 : vector<1x128xf32> to vector<2x128xf32>
    %41 = arith.mulf %36, %40 : vector<2x128xf32>
    %cst_21 = arith.constant dense<0.000000e+00> : vector<2xf32>
    %42 = vector.multi_reduction <add>, %41, %cst_21 [1] : vector<2x128xf32> to vector<2xf32>
    %43 = vector.shape_cast %42 : vector<2xf32> to vector<2x1xf32>
    %c2_22 = arith.constant 2 : index
    %c0_23 = arith.constant 0 : index
    %c0_24 = arith.constant 0 : index
    %44 = vector.load %arg2[%c2_22, %c0_23, %c0_24] : memref<3x1x128xf32, #tpu.memory_space<vmem>>, vector<1x1x1xf32>
    %45 = vector.shape_cast %44 : vector<1x1x1xf32> to vector<1x1xf32>
    %46 = vector.broadcast %45 : vector<1x1xf32> to vector<2x1xf32>
    %47 = arith.addf %43, %46 : vector<2x1xf32>
    %c0_25 = arith.constant 0 : index
    %c0_26 = arith.constant 0 : index
    %48 = vector.load %arg3[%c0_25, %c0_26] : memref<2x1xf32, #tpu.memory_space<vmem>>, vector<2x1xf32>
    tpu.vector_store %arg3[%c0_25, %c0_26], %47 {strides = array<i32>} : memref<2x1xf32, #tpu.memory_space<vmem>>, vector<2x1xf32>,
    return
  }
}

</mosaic_0001>

<bundles_post_ra>
// kernel: tpu_custom_call.1
= control target key start
LH: loop header
LB: loop body
LE: loop exit
PB: predicated region body
PF: predicated region fallthrough
CT: control target
= control target key end

     0   :  { %8 = vsyncpa [#allocation3], 0  ;;  %s493_s0 = inlined_call_operand.hbm [shape: bf16[8,128], index: 0, kind: input, shape index: {}]   ;;  %s494_s1 = inlined_call_operand.hbm [shape: bf16[3,128,128], index: 1, kind: input, shape index: {}]   ;;  %s495_s2 = inlined_call_operand.hbm [shape: f32[3,1,128], index: 2, kind: input, shape index: {}]   ;;  %s496_s3 = inlined_call_operand.vmem [shape: f32[2,1], index: 3, kind: output, shape index: {}]  }
   0x1   :  { %9 = vsyncpa [#allocation5], 0  ;;  %s25_s14 = sshll.u32 %s494_s1, 4  ;;  %s453_s15 = smov [#allocation4]   ;;  %s26_s14 = int_to_ptr.hbm [resolvable:$true] %s25_s14 }
   0x2   :  { %s27_s16 = sshll.u32 %s453_s15, 4  ;;  %s15_s19 = sshll.u32 %s493_s0, 4  ;;  %s28_s16 = int_to_ptr.vmem [resolvable:$true] %s27_s16  ;;  %s16_s19 = int_to_ptr.hbm [resolvable:$true] %s15_s19 }
   0x3   :  { %s454_s20 = smov 64   ;;  %s455_s21 = smov 4  }
   0x4   :  { %33 = dma.hbm_to_vmem [thread:$0]  %s26_s14, 3072, %s28_s16, [#allocation5], %s454_s20, %s454_s20, %s455_s21  }
   0x5   :  { %s456_s22 = smov [#allocation2]   ;;  %s38_s26 = sshll.u32 %s495_s2, 4  ;;  %s39_s26 = int_to_ptr.hbm [resolvable:$true] %s38_s26 }
   0x6   :  { %s17_s23 = sshll.u32 %s456_s22, 4  ;;  %s457_s1 = smov [#allocation6]   ;;  %s18_s23 = int_to_ptr.vmem [resolvable:$true] %s17_s23 }
   0x7   :  { %20 = dma.hbm_to_vmem [thread:$0]  %s16_s19, 64, %s18_s23, [#allocation3]  }
   0x8   :  { %s40_s27 = sshll.u32 %s457_s1, 4  ;;  %s458_s28 = smov 16   ;;  %s41_s27 = int_to_ptr.vmem [resolvable:$true] %s40_s27 }
   0x9   :  { %s459_s29 = smov 1  }
   0xa   :  { %46 = dma.hbm_to_vmem [thread:$0]  %s39_s26, 48, %s41_s27, [#allocation5], %s458_s28, %s458_s28, %s459_s29  }
   0xb   :  { %449 = dma.done.wait [#allocation3], 64  }
   0xc   :  { %450 = vsyncadd [#allocation3], 4294967232 }
   0xd   :  { %451 = dma.done.wait [#allocation5], 3120  }
   0xe   :  { %452 = vsyncadd [#allocation5], 4294964176  ;;  %v357_v0 = vld [vmem:[#allocation4 + $0x38] sm:$0xff]  ;;  %v356_v1 = vld [vmem:[#allocation4 + $0x30] sm:$0xff]  ;;  %v229_v23 = vlaneseq  ;;  %vm245_vm3 = vcmask 1043456   ;;  %v460_v33 = vmov 0.0  }
   0xf   :  { %129 = vmatpush.bf16.msra.mxu0 %v357_v0  ;;  %v365_v2 = vld [vmem:[#allocation4 + $0x78] sm:$0xff]  ;;  %v364_v3 = vld [vmem:[#allocation4 + $0x70] sm:$0xff]  ;;  %v355_v4 = vld [vmem:[#allocation4 + $0x28] sm:$0xff]  ;;  %vm241_vm4 = vcmask 64512   ;;  %vm267_vm5 = vcmask 1041408   ;;  %vm277_vm6 = vcmask 1024  }
  0x10   :  { %214 = vmatpush.bf16.msra.mxu1 %v365_v2  ;;  %v363_v5 = vld [vmem:[#allocation4 + $0x68] sm:$0xff]  ;;  %v354_v6 = vld [vmem:[#allocation4 + $0x20] sm:$0xff]  ;;  %v353_v8 = vld [vmem:[#allocation4 + $0x18] sm:$0xff]  ;;  %v230_v24 = vshrl.u32 %v229_v23, 7  ;;  %v232_v26 = vand.u32 127, %v229_v23 }
  0x11   :  { %v362_v7 = vld [vmem:[#allocation4 + $0x60] sm:$0xff]  ;;  %v361_v9 = vld [vmem:[#allocation4 + $0x58] sm:$0xff]  ;;  %v352_v10 = vld [vmem:[#allocation4 + $0x10] sm:$0xff] }
  0x12   :  { %v360_v11 = vld [vmem:[#allocation4 + $0x50] sm:$0xff]  ;;  %v351_v12 = vld [vmem:[#allocation4 + $0x8] sm:$0xff]  ;;  %v350_v13 = vld [vmem:[#allocation4] sm:$0xff]  ;;  %v235_v25 = vadd.s32 1, %v230_v24  ;;  %v233_v27 = vmul.u32 4, %v230_v24 }
  0x13   :  { %130 = vmatpush.bf16.msra.mxu0 %v356_v1  ;;  %v60_v14 = vld [vmem:[#allocation2] sm:$0xf]  ;;  %v359_v15 = vld [vmem:[#allocation4 + $0x48] sm:$0xff]  ;;  %v358_v16 = vld [vmem:[#allocation4 + $0x40] sm:$0xff] }
  0x14   :  { %215 = vmatpush.bf16.msra.mxu1 %v364_v3  ;;  %v374_v17 = vld [vmem:[#allocation6] ss:$0 sm:$0xff]  ;;  %v236_v28 = vmul.u32 4, %v235_v25  ;;  %v375_v29 = vld [vmem:[#allocation6 + $0x1] ss:$0 sm:$0xff]  ;;  %vm234_vm0 = vcmp.ge.s32.totalorder %v232_v26, %v233_v27 }
  0x15   :  { %v263_v39 = vld [vmem:[#allocation4 + $0x80] sm:$0x1]  ;;  %v376_v46 = vld [vmem:[#allocation6 + $0x2] ss:$0 sm:$0xff] }
  0x16   :  { %vm237_vm1 = vcmp.lt.s32.totalorder %v232_v26, %v236_v28  ;;  %v264_v40 = vunpack.c.l.bf16 %v263_v39 }
  0x17   :  { %131 = vmatpush.bf16.msra.mxu0 %v355_v4  ;;  %vm238_vm2 = vmand %vm234_vm0, %vm237_vm1 }
  0x18   :  { %216 = vmatpush.bf16.msra.mxu1 %v363_v5  ;;  %v239_v34 = vsel %vm238_vm2, 0.25, %v460_v33  ;;  %v265_v41 = vperm.slane %v264_v40, 0 }
  0x19   :  { %v240_v37 = vpack.c.bf16 %v239_v34, %v239_v34 }
  0x1b   :  { %132 = vmatpush.bf16.msra.mxu0 %v354_v6 }
  0x1c   :  { %217 = vmatpush.bf16.msra.mxu1 %v362_v7 }
  0x1f   :  { %133 = vmatpush.bf16.msra.mxu0 %v353_v8 }
  0x20   :  { %218 = vmatpush.bf16.msra.mxu1 %v361_v9 }
  0x23   :  { %134 = vmatpush.bf16.msra.mxu0 %v352_v10 }
  0x24   :  { %219 = vmatpush.bf16.msra.mxu1 %v360_v11 }
  0x27   :  { %135 = vmatpush.bf16.msra.mxu0 %v351_v12 }
  0x28   :  { %220 = vmatpush.bf16.msra.mxu1 %v359_v15 }
  0x2b   :  { %136 = vmatpush.bf16.msra.mxu0 %v350_v13 }
  0x2c   :  { %221 = vmatpush.bf16.msra.mxu1 %v358_v16 }
  0x2e   :  { %137 = vmatmul.bf16.vlgmr.msra.gmra.mxu0 %v60_v14 }
  0xab   :  { %v138_v18 = vpop.f32.mrf.mxu0 }
  0xac   :  { %v139_v19 = vadd.f32 %v374_v17, %v138_v18 }
  0xae   :  { %v142_v20 = vmax.f32 %v139_v19, 0.0 }
  0xb0   :  { %v143_v21 = vpack.c.bf16 %v142_v20, %v142_v20 }
  0xb2   :  { %222 = vmatmul.bf16.vlgmr.msra.gmra.mxu1 %v143_v21 }
  0xb3   :  { %v140_v22 = vpop.f32.mrf.mxu0 }
 0x12f   :  { %v223_v30 = vpop.f32.mrf.mxu1 }
 0x130   :  { %v224_v31 = vadd.f32 %v375_v29, %v223_v30 }
 0x132   :  { %v227_v32 = vmax.f32 %v224_v31, 0.0 }
 0x134   :  { %v228_v35 = vpack.c.bf16 %v227_v32, %v227_v32 }
 0x136   :  { %v247_v36 = vsel %vm245_vm3, %v228_v35, 0 }
 0x137   :  { %v225_v38 = vpop.f32.mrf.mxu1  ;;  %256 = vmatpush.bf16.msra.mxu2 %v247_v36 }
 0x13a   :  { %349 = vmatmul.msk.bf16.vlgmr.msra.gmra.mxu2 %vm241_vm4, %v240_v37 }
 0x1bd   :  { %v258_v42 = vpop.f32.mrf.mxu2 }
 0x1be   :  { %v266_v43 = vmul.f32 %v265_v41, %v258_v42 }
 0x1c0   :  { %v268_v44 = vsel %vm267_vm5, %v266_v43, 0.0 }
 0x1c1   :  { %269 = vadd.xlane.f32.xlu0 %v268_v44 }
 0x1c5   :  { %v260_v45 = vpop.f32.mrf.mxu2 }
 0x234   :  { %v270_v47 = vpop.xlane.xlu0 %269 }
 0x235   :  { %v276_v48 = vadd.f32 %v376_v46, %v270_v47 }
 0x237   :  { %278 = vst.msk [vmem:[%s496_s3] sm:$0x3] %vm277_vm6, %v276_v48 }
 0x238   :  { %283 = vsyncpa [#allocation3], 1 }
 0x239   :  { %284 = vsyncpa [#allocation5], 1 }

</bundles_post_ra>
